<compile_context>
chip_gen: v6e
topology: v6e:2x2x1
jax: 0.10.0
libtpu: 0.0.40
codegen_flags: <defaults>
</compile_context>

<pallas_src>
import jax
import jax.numpy as jnp
from jax.experimental import pallas as pl
from jax.experimental.pallas import tpu as pltpu

# ---------------------------------------------------------------------------
# Model configuration (mirrors MLP(input_dim, hidden_dims, activation,
# dropout_rate, task) from src/Architectures.py)
# ---------------------------------------------------------------------------
INPUT_DIM = 16
HIDDEN_DIMS = (32, 32)
ACTIVATION = "relu"
DROPOUT_RATE = 0.1          # TODO(synk): dropout is identity here (eval/inference semantics)
TASK = "classification_and_regression"
BATCH = 8                   # small example batch per the spec
TILE_B = 128                # batch tile on the lane axis (multiple of 128)

_ACT_FNS = {
    "relu": lambda v: jnp.maximum(v, 0.0),
    "tanh": jnp.tanh,
    "leakyrelu": lambda v: jnp.where(v > 0, v, 0.01 * v),
    "elu": lambda v: jnp.where(v > 0, v, jnp.expm1(v)),
}

# ---------------------------------------------------------------------------
# Packed-parameter slab layout
# ---------------------------------------------------------------------------
_MAX_IN = max(INPUT_DIM, *HIDDEN_DIMS)   # widest in_features across all layers
BIAS_COL = _MAX_IN                       # last slab column holds the bias
P_COLS = _MAX_IN + 1


def _round8(n):
    return ((n + 7) // 8) * 8


def _build_layout():
    """Row offsets of each (fused) layer segment inside the packed slab."""
    offs = {}
    off = 0
    for i, h in enumerate(HIDDEN_DIMS):
        offs[f"shared{i}"] = off
        off += _round8(h)
    last = HIDDEN_DIMS[-1]
    half = last // 2
    offs["branch"] = off;   off += _round8(half + last)   # [cls layer1 ; reg layer1] fused
    offs["cls_head"] = off; off += _round8(1)
    offs["reg_mid"] = off;  off += _round8(half)
    offs["reg_head"] = off; off += _round8(1)
    return offs, off


OFFS, P_ROWS = _build_layout()


# ---------------------------------------------------------------------------
# Parameter construction (deterministic, PyTorch-Linear-like uniform init)
# Weights are kept in PyTorch layout: W (out_features, in_features), b (out_features,)
# ---------------------------------------------------------------------------
def init_params(key):
    last = HIDDEN_DIMS[-1]
    half = last // 2
    dims = []
    cur = INPUT_DIM
    for h in HIDDEN_DIMS:                          # shared trunk
        dims.append((cur, h))
        cur = h
    dims += [(cur, half), (half, 1)]               # classifier branch
    dims += [(cur, cur), (cur, half), (half, 1)]   # regressor branch

    params = []
    for fan_in, fan_out in dims:
        key, sub = jax.random.split(key)
        kw, kb = jax.random.split(sub)
        bound = 1.0 / (fan_in ** 0.5)
        w = jax.random.uniform(kw, (fan_out, fan_in), jnp.float32, -bound, bound)
        b = jax.random.uniform(kb, (fan_out,), jnp.float32, -bound, bound)
        params.append((w, b))
    return params


def pack_params(params):
    """Pack every Linear's (W, b) into one f32 slab, 8-row-aligned per layer segment."""
    n_shared = len(HIDDEN_DIMS)
    slab = jnp.zeros((P_ROWS, P_COLS), jnp.float32)

    def put(s, row, w, b):
        fo, fi = w.shape
        s = s.at[row:row + fo, 0:fi].set(w)
        s = s.at[row:row + fo, BIAS_COL].set(b)
        return s

    for i in range(n_shared):
        w, b = params[i]
        slab = put(slab, OFFS[f"shared{i}"], w, b)
    (wc1, bc1), (wc2, bc2) = params[n_shared], params[n_shared + 1]
    (wr1, br1), (wr2, br2), (wr3, br3) = params[n_shared + 2:n_shared + 5]
    slab = put(slab, OFFS["branch"], wc1, bc1)                  # classifier entry rows
    slab = put(slab, OFFS["branch"] + wc1.shape[0], wr1, br1)   # regressor entry rows
    slab = put(slab, OFFS["cls_head"], wc2, bc2)
    slab = put(slab, OFFS["reg_mid"], wr2, br2)
    slab = put(slab, OFFS["reg_head"], wr3, br3)
    return slab


# ---------------------------------------------------------------------------
# Pallas kernel: whole MLP forward, transposed (features, TILE_B) layout.
# ---------------------------------------------------------------------------
def mlp_kernel(x_ref, p_ref, out_ref):
    act = _ACT_FNS[ACTIVATION]
    last = HIDDEN_DIMS[-1]
    half = last // 2

    def layer(h, off, fo, fi):
        w = p_ref[off:off + fo, 0:fi]                     # (fo, fi) static slab slice
        b = p_ref[off:off + fo, BIAS_COL:BIAS_COL + 1]    # (fo, 1) lane-broadcast bias
        return jnp.dot(w, h, preferred_element_type=jnp.float32) + b

    h = x_ref[...]                                        # (INPUT_DIM, TILE_B) f32
    cur = INPUT_DIM
    for i, hd in enumerate(HIDDEN_DIMS):
        h = act(layer(h, OFFS[f"shared{i}"], hd, cur))
        cur = hd
        # TODO(synk): training-mode dropout would need pltpu.prng_seed/prng_random_bits.

    # Fused branch-entry matmul: rows [0:half) = classifier L1, [half:half+last) = regressor L1.
    branch = act(layer(h, OFFS["branch"], half + last, last))   # (half+last, TILE_B)
    c = branch[0:half, :]
    r = branch[half:half + last, :]

    cls = jax.nn.sigmoid(layer(c, OFFS["cls_head"], 1, half))   # (1, TILE_B)
    r = act(layer(r, OFFS["reg_mid"], half, last))
    reg = layer(r, OFFS["reg_head"], 1, half)                   # (1, TILE_B)

    if TASK == "classification_and_regression":
        out_ref[...] = jnp.concatenate([cls, reg], axis=0)      # one lane-dense store
    elif TASK == "binary_classification":
        out_ref[...] = cls
    else:  # regression
        out_ref[...] = reg


def mlp_forward(x, slab, *, tile_b=TILE_B):
    B = x.shape[0]
    out_dim = 2 if TASK == "classification_and_regression" else 1
    n_tiles = int(pl.cdiv(B, tile_b))
    b_pad = n_tiles * tile_b

    xT = x.T                                              # (INPUT_DIM, B) batch-on-lanes
    if b_pad != B:
        xT = jnp.pad(xT, ((0, 0), (0, b_pad - B)))        # tail tile padded with zeros

    outT = pl.pallas_call(
        mlp_kernel,
        out_shape=jax.ShapeDtypeStruct((out_dim, b_pad), jnp.float32),
        grid=(n_tiles,),
        in_specs=[
            pl.BlockSpec((INPUT_DIM, tile_b), lambda i: (0, i)),   # x^T batch tile
            pl.BlockSpec((P_ROWS, P_COLS), lambda i: (0, 0)),      # packed param slab
        ],
        out_specs=pl.BlockSpec((out_dim, tile_b), lambda i: (0, i)),
        compiler_params=pltpu.CompilerParams(
            dimension_semantics=("parallel",),             # megacore sharding on v7x
        ),
    )(xT, slab)
    return outT[:, :B].T                                   # back to (B, out_dim)


# ---------------------------------------------------------------------------
# Pure-JAX reference (standard (B, features) layout) for a sanity check.
# ---------------------------------------------------------------------------
def mlp_reference(x, params):
    act = _ACT_FNS[ACTIVATION]
    n_shared = len(HIDDEN_DIMS)

    def lin(h, w, b):
        return h @ w.T + b

    h = x
    for i in range(n_shared):
        w, b = params[i]
        h = act(lin(h, w, b))
    (wc1, bc1), (wc2, bc2) = params[n_shared], params[n_shared + 1]
    (wr1, br1), (wr2, br2), (wr3, br3) = params[n_shared + 2:n_shared + 5]
    c = act(lin(h, wc1, bc1))
    cls = jax.nn.sigmoid(lin(c, wc2, bc2))
    r = act(lin(h, wr1, br1))
    r = act(lin(r, wr2, br2))
    reg = lin(r, wr3, br3)
    if TASK == "classification_and_regression":
        return jnp.concatenate([cls, reg], axis=1)
    elif TASK == "binary_classification":
        return cls
    return reg


if __name__ == "__main__":
    key = jax.random.PRNGKey(0)
    key, kx = jax.random.split(key)
    x = jax.random.normal(kx, (BATCH, INPUT_DIM), jnp.float32)
    params = init_params(key)
    slab = pack_params(params)

    out = jax.block_until_ready(mlp_forward(x, slab))
    ref = mlp_reference(x, params)

    assert out.shape == (BATCH, 2), out.shape
    assert jnp.allclose(out, ref, atol=1e-4, rtol=1e-4), (out, ref)

    print("KERNEL_OK")
</pallas_src>

<mosaic_0001>
module attributes {stable_mosaic.version = 11 : i64} {
  func.func @mlp_kernel(%arg0: i32, %arg1: memref<16x128xf32, #tpu.memory_space<vmem>>, %arg2: memref<144x33xf32, #tpu.memory_space<vmem>>, %arg3: memref<2x128xf32, #tpu.memory_space<vmem>>) attributes {dimension_semantics = [#tpu.dimension_semantics<parallel>], iteration_bounds = array<i64: 1>, scalar_prefetch = 0 : i64, scratch_operands = 0 : i64, tpu.core_type = #tpu.core_type<tc>, window_params = [{transform_indices = @transform_0, window_bounds = array<i64: 16, 128>}, {pipeline_mode = #tpu.pipeline_mode<synchronous>, transform_indices = @transform_1, window_bounds = array<i64: 144, 33>}, {transform_indices = @transform_2, window_bounds = array<i64: 2, 128>}]} {
    %c0 = arith.constant 0 : index
    %c0_0 = arith.constant 0 : index
    %0 = vector.load %arg1[%c0, %c0_0] : memref<16x128xf32, #tpu.memory_space<vmem>>, vector<16x128xf32>
    %c0_1 = arith.constant 0 : index
    %c0_2 = arith.constant 0 : index
    %1 = vector.load %arg2[%c0_1, %c0_2] : memref<144x33xf32, #tpu.memory_space<vmem>>, vector<32x16xf32>
    %c0_3 = arith.constant 0 : index
    %c32 = arith.constant 32 : index
    %2 = vector.load %arg2[%c0_3, %c32] : memref<144x33xf32, #tpu.memory_space<vmem>>, vector<32x1xf32>
    %cst = arith.constant dense<0.000000e+00> : vector<32x128xf32>
    %3 = tpu.matmul %1, %0, %cst {dimension_numbers = #tpu.dot_dimension_numbers<[1], [0], [0], [1], [0, 0, 1, 1], [], []>} : vector<32x16xf32>, vector<16x128xf32>, vector<32x128xf32> -> vector<32x128xf32>
    %4 = vector.broadcast %2 : vector<32x1xf32> to vector<32x128xf32>
    %5 = arith.addf %3, %4 : vector<32x128xf32>
    %cst_4 = arith.constant 0.000000e+00 : f32
    %6 = vector.broadcast %cst_4 : f32 to vector<32x128xf32>
    %7 = arith.maximumf %5, %6 : vector<32x128xf32>
    %c32_5 = arith.constant 32 : index
    %c0_6 = arith.constant 0 : index
    %8 = vector.load %arg2[%c32_5, %c0_6] : memref<144x33xf32, #tpu.memory_space<vmem>>, vector<32x32xf32>
    %c32_7 = arith.constant 32 : index
    %c32_8 = arith.constant 32 : index
    %9 = vector.load %arg2[%c32_7, %c32_8] : memref<144x33xf32, #tpu.memory_space<vmem>>, vector<32x1xf32>
    %cst_9 = arith.constant dense<0.000000e+00> : vector<32x128xf32>
    %10 = tpu.matmul %8, %7, %cst_9 {dimension_numbers = #tpu.dot_dimension_numbers<[1], [0], [0], [1], [0, 0, 1, 1], [], []>} : vector<32x32xf32>, vector<32x128xf32>, vector<32x128xf32> -> vector<32x128xf32>
    %11 = vector.broadcast %9 : vector<32x1xf32> to vector<32x128xf32>
    %12 = arith.addf %10, %11 : vector<32x128xf32>
    %cst_10 = arith.constant 0.000000e+00 : f32
    %13 = vector.broadcast %cst_10 : f32 to vector<32x128xf32>
    %14 = arith.maximumf %12, %13 : vector<32x128xf32>
    %c64 = arith.constant 64 : index
    %c0_11 = arith.constant 0 : index
    %15 = vector.load %arg2[%c64, %c0_11] : memref<144x33xf32, #tpu.memory_space<vmem>>, vector<48x32xf32>
    %c64_12 = arith.constant 64 : index
    %c32_13 = arith.constant 32 : index
    %16 = vector.load %arg2[%c64_12, %c32_13] : memref<144x33xf32, #tpu.memory_space<vmem>>, vector<48x1xf32>
    %cst_14 = arith.constant dense<0.000000e+00> : vector<48x128xf32>
    %17 = tpu.matmul %15, %14, %cst_14 {dimension_numbers = #tpu.dot_dimension_numbers<[1], [0], [0], [1], [0, 0, 1, 1], [], []>} : vector<48x32xf32>, vector<32x128xf32>, vector<48x128xf32> -> vector<48x128xf32>
    %18 = vector.broadcast %16 : vector<48x1xf32> to vector<48x128xf32>
    %19 = arith.addf %17, %18 : vector<48x128xf32>
    %cst_15 = arith.constant 0.000000e+00 : f32
    %20 = vector.broadcast %cst_15 : f32 to vector<48x128xf32>
    %21 = arith.maximumf %19, %20 : vector<48x128xf32>
    %22 = vector.extract_strided_slice %21 {offsets = [0, 0], sizes = [16, 128], strides = [1, 1]} : vector<48x128xf32> to vector<16x128xf32>
    %23 = vector.extract_strided_slice %21 {offsets = [16, 0], sizes = [32, 128], strides = [1, 1]} : vector<48x128xf32> to vector<32x128xf32>
    %c112 = arith.constant 112 : index
    %c0_16 = arith.constant 0 : index
    %24 = vector.load %arg2[%c112, %c0_16] : memref<144x33xf32, #tpu.memory_space<vmem>>, vector<1x16xf32>
    %c112_17 = arith.constant 112 : index
    %c32_18 = arith.constant 32 : index
    %25 = vector.load %arg2[%c112_17, %c32_18] : memref<144x33xf32, #tpu.memory_space<vmem>>, vector<1x1xf32>
    %cst_19 = arith.constant dense<0.000000e+00> : vector<1x128xf32>
    %26 = tpu.matmul %24, %22, %cst_19 {dimension_numbers = #tpu.dot_dimension_numbers<[1], [0], [0], [1], [0, 0, 1, 1], [], []>} : vector<1x16xf32>, vector<16x128xf32>, vector<1x128xf32> -> vector<1x128xf32>
    %27 = vector.broadcast %25 : vector<1x1xf32> to vector<1x128xf32>
    %28 = arith.addf %26, %27 : vector<1x128xf32>
    %29 = arith.negf %28 : vector<1x128xf32>
    %30 = math.exp %29 : vector<1x128xf32>
    %cst_20 = arith.constant 1.000000e+00 : f32
    %31 = vector.broadcast %cst_20 : f32 to vector<1x128xf32>
    %32 = arith.addf %31, %30 : vector<1x128xf32>
    %33 = arith.divf %31, %32 : vector<1x128xf32>
    %c120 = arith.constant 120 : index
    %c0_21 = arith.constant 0 : index
    %34 = vector.load %arg2[%c120, %c0_21] : memref<144x33xf32, #tpu.memory_space<vmem>>, vector<16x32xf32>
    %c120_22 = arith.constant 120 : index
    %c32_23 = arith.constant 32 : index
    %35 = vector.load %arg2[%c120_22, %c32_23] : memref<144x33xf32, #tpu.memory_space<vmem>>, vector<16x1xf32>
    %cst_24 = arith.constant dense<0.000000e+00> : vector<16x128xf32>
    %36 = tpu.matmul %34, %23, %cst_24 {dimension_numbers = #tpu.dot_dimension_numbers<[1], [0], [0], [1], [0, 0, 1, 1], [], []>} : vector<16x32xf32>, vector<32x128xf32>, vector<16x128xf32> -> vector<16x128xf32>
    %37 = vector.broadcast %35 : vector<16x1xf32> to vector<16x128xf32>
    %38 = arith.addf %36, %37 : vector<16x128xf32>
    %cst_25 = arith.constant 0.000000e+00 : f32
    %39 = vector.broadcast %cst_25 : f32 to vector<16x128xf32>
    %40 = arith.maximumf %38, %39 : vector<16x128xf32>
    %c136 = arith.constant 136 : index
    %c0_26 = arith.constant 0 : index
    %41 = vector.load %arg2[%c136, %c0_26] : memref<144x33xf32, #tpu.memory_space<vmem>>, vector<1x16xf32>
    %c136_27 = arith.constant 136 : index
    %c32_28 = arith.constant 32 : index
    %42 = vector.load %arg2[%c136_27, %c32_28] : memref<144x33xf32, #tpu.memory_space<vmem>>, vector<1x1xf32>
    %cst_29 = arith.constant dense<0.000000e+00> : vector<1x128xf32>
    %43 = tpu.matmul %41, %40, %cst_29 {dimension_numbers = #tpu.dot_dimension_numbers<[1], [0], [0], [1], [0, 0, 1, 1], [], []>} : vector<1x16xf32>, vector<16x128xf32>, vector<1x128xf32> -> vector<1x128xf32>
    %44 = vector.broadcast %42 : vector<1x1xf32> to vector<1x128xf32>
    %45 = arith.addf %43, %44 : vector<1x128xf32>
    %46 = tpu.concatenate %33, %45 in 0 : vector<1x128xf32>, vector<1x128xf32> -> vector<2x128xf32>
    %c0_30 = arith.constant 0 : index
    %c0_31 = arith.constant 0 : index
    %47 = vector.load %arg3[%c0_30, %c0_31] : memref<2x128xf32, #tpu.memory_space<vmem>>, vector<2x128xf32>
    tpu.vector_store %arg3[%c0_30, %c0_31], %46 {strides = array<i32>} : memref<2x128xf32, #tpu.memory_space<vmem>>, vector<2x128xf32>,
    return
  }
  func.func @transform_0(%arg0: i32) -> (i32, i32) {
    %c0_i32 = arith.constant 0 : i32
    %c0_i32_0 = arith.constant 0 : i32
    return %c0_i32, %arg0 : i32, i32
  }
  func.func @transform_1(%arg0: i32) -> (i32, i32) {
    %c0_i32 = arith.constant 0 : i32
    %c0_i32_0 = arith.constant 0 : i32
    %c0_i32_1 = arith.constant 0 : i32
    return %c0_i32, %c0_i32_0 : i32, i32
  }
  func.func @transform_2(%arg0: i32) -> (i32, i32) {
    %c0_i32 = arith.constant 0 : i32
    %c0_i32_0 = arith.constant 0 : i32
    return %c0_i32, %arg0 : i32, i32
  }
}

</mosaic_0001>

<bundles_post_ra>
// kernel: tpu_custom_call.1
= control target key start
LH: loop header
LB: loop body
LE: loop exit
PB: predicated region body
PF: predicated region fallthrough
CT: control target
= control target key end

     0   :  { %vm38_vm0 = vcmask 130048   ;;  %v835_v5 = vmov 32   ;;  %s973_s0 = inlined_call_operand.vmem [shape: f32[16,128], index: 0, kind: input, shape index: {}]   ;;  %s974_s1 = inlined_call_operand.vmem [shape: f32[144,33], index: 1, kind: input, shape index: {}]   ;;  %s975_s2 = inlined_call_operand.hbm [shape: f32[2,128], index: 2, kind: output, shape index: {}]  }
   0x1   :  { %v13_v0 = vld [vmem:[%s973_s0 + $0x8] sm:$0xff]  ;;  %v12_v1 = vld [vmem:[%s973_s0] sm:$0xff]  ;;  %v17_v4 = vld [vmem:[%s974_s1 + $0x18] sm:$0xff]  ;;  %807 = vset.pattern.permute.xlu0 %v835_v5  ;;  %808 = vset.pattern.permute.xlu1 %v835_v5 }
   0x2   :  { %v14_v2 = vld [vmem:[%s974_s1] sm:$0xff]  ;;  %737 = vmatprep.subr.mxu0 %v13_v0  ;;  %v15_v3 = vld [vmem:[%s974_s1 + $0x8] sm:$0xff]  ;;  %v16_v6 = vld [vmem:[%s974_s1 + $0x10] sm:$0xff]  ;;  %35 = vperm.xlu0 %807, %v17_v4  }
   0x3   :  { %741 = vmatprep.mubr.msk.f32.mxu0 %vm38_vm0, %v14_v2  ;;  %738 = vmatpush3.msra.mxu0 %v13_v0 }
   0x4   :  { %739 = vmatprep.subr.mxu0 %v12_v1  ;;  %25 = vperm.xlu1 %808, %v15_v3  }
   0x5   :  { %740 = vmatpush3.msra.mxu0 %v12_v1 }
   0x6   :  { %742 = vmatmul.mubr.msk.f32.vlgmr.msra.gmra.mxu0 %vm38_vm0, %v15_v3 }
   0x7   :  { %744 = vmatprep.mubr.msk.f32.mxu0 %vm38_vm0, %v16_v6 }
   0x8   :  { %7 = vsyncpa [#allocation3], 0  ;;  %30 = vperm.xlu0 %807, %v16_v6   ;;  %v139_v7 = vld [vmem:[%s974_s1 + $0x38] sm:$0xff]  ;;  %20 = vperm.xlu1 %808, %v14_v2   ;;  %v138_v8 = vld [vmem:[%s974_s1 + $0x30] sm:$0xff]  ;;  %vm160_vm1 = vcmask 261120   ;;  %v836_v53 = vmov 0.0  }
   0x9   :  { %v137_v9 = vld [vmem:[%s974_s1 + $0x28] sm:$0xff]  ;;  %v136_v10 = vld [vmem:[%s974_s1 + $0x20] sm:$0xff]  ;;  %v902_v13 = vld [vmem:[%s974_s1 + $0x58] sm:$0xff]  ;;  %vm837_vm2 = vmmov 0   ;;  %vm665_vm3 = vcmask 1040384  }
   0xa   :  { %745 = vmatmul.mubr.msk.f32.gmra.mxu0 %vm38_vm0, %v17_v4  ;;  %v891_v11 = vld [vmem:[%s974_s1 + $0x68] sm:$0xff]  ;;  %v896_v12 = vld [vmem:[%s974_s1 + $0x60] sm:$0xff]  ;;  %v908_v14 = vld [vmem:[%s974_s1 + $0x50] sm:$0xff]  ;;  %755 = vmatprep.mubr.msk.f32.mxu1 %vm160_vm1, %v136_v10 }
   0xb   :  { %v914_v15 = vld [vmem:[%s974_s1 + $0x48] sm:$0xff]  ;;  %v258_v16 = vld [vmem:[%s974_s1 + $0x40] sm:$0xff]  ;;  %v929_v18 = vld [vmem:[%s974_s1 + $0x78] sm:$0xff] }
   0xc   :  { %157 = vperm.xlu0 %807, %v139_v7   ;;  %152 = vperm.xlu1 %808, %v138_v8   ;;  %v924_v17 = vld [vmem:[%s974_s1 + $0x80] sm:$0xff]  ;;  %v935_v19 = vld [vmem:[%s974_s1 + $0x70] sm:$0x1]  ;;  %v941_v20 = vld [vmem:[%s974_s1 + $0x88] sm:$0x1]  ;;  %s838_s1 = smov [#allocation2]  }
   0xd   :  { %769 = vmatprep.mubr.msk.f32.mxu0 %vm160_vm1, %v258_v16  ;;  %s674_s19 = sshll.u32 %s838_s1, 4  ;;  %s675_s19 = int_to_ptr.vmem [resolvable:$true] %s674_s19 }
   0xe   :  { %s813_s20 = scalar_lea.vmem %s675_s19, 32  ;;  %p818_p1 = scmp.lt.s32.totalorder %s675_s19, %s675_s19 }
   0xf   :  { %p814_p0 = scmp.ne.s32.totalorder %s675_s19, %s813_s20  ;;  %p819_p2 = scmp.lt.s32.totalorder %s813_s20, %s813_s20 }
  0x10   :  { %147 = vperm.xlu0 %807, %v137_v9   ;;  %142 = vperm.xlu1 %808, %v136_v10  }
  0x11   :  { %p820_p3 = por %p819_p2, %p818_p1 }
  0x13   :  { %p821_p4 = pnand %p820_p3, %p814_p0 }
  0x14   :  { %291 = vperm.xlu0 %807, %v891_v11   ;;  %286 = vperm.xlu1 %808, %v896_v12  }
  0x18   :  { %281 = vperm.xlu0 %807, %v902_v13   ;;  %276 = vperm.xlu1 %808, %v908_v14  }
  0x1c   :  { %271 = vperm.xlu0 %807, %v914_v15   ;;  %266 = vperm.xlu1 %808, %v258_v16  }
  0x20   :  { %500 = vperm.xlu0 %807, %v924_v17   ;;  %495 = vperm.xlu1 %808, %v929_v18  }
  0x24   :  { %410 = vperm.xlu0 %807, %v935_v19   ;;  %587 = vperm.xlu1 %808, %v941_v20  }
  0x7d   :  { %v36_v21 = vpop.permute.xlu0 %35 }
  0x7f   :  { %v26_v23 = vpop.permute.xlu1 %25 }
  0x83   :  { %v31_v27 = vpop.permute.xlu0 %30  ;;  %v21_v32 = vpop.permute.xlu1 %20 }
  0x87   :  { %v158_v37 = vpop.permute.xlu0 %157  ;;  %v153_v39 = vpop.permute.xlu1 %152 }
  0x8b   :  { %v148_v43 = vpop.permute.xlu0 %147  ;;  %v143_v48 = vpop.permute.xlu1 %142 }
  0x8f   :  { %v292_v54 = vpop.permute.xlu0 %291  ;;  %v287_v55 = vpop.permute.xlu1 %286 }
  0x93   :  { %v282_v56 = vpop.permute.xlu0 %281  ;;  %v277_v57 = vpop.permute.xlu1 %276 }
  0x97   :  { %v272_v58 = vpop.permute.xlu0 %271  ;;  %v267_v61 = vpop.permute.xlu1 %266 }
  0x9b   :  { %v501_v16 = vpop.permute.xlu0 %500 }
  0xc6   :  { %v743_v22 = vpop.f32.mrf.mxu0 }
  0xc7   :  { %v119_v29 = vadd.f32 %v743_v22, %v26_v23 }
  0xc8   :  { %v113_v24 = vpop.f32.mrf.mxu0 }
  0xc9   :  { %v114_v33 = vadd.f32 %v113_v24, %v21_v32  ;;  %v133_v35 = vmax.f32 %v119_v29, 0.0 }
  0xca   :  { %v746_v25 = vpop.f32.mrf.mxu0 }
  0xcb   :  { %v129_v26 = vadd.f32 %v746_v25, %v36_v21  ;;  %v132_v36 = vmax.f32 %v114_v33, 0.0  ;;  %v496_v21 = vpop.permute.xlu1 %495 }
  0xcc   :  { %v123_v28 = vpop.f32.mrf.mxu0 }
  0xcd   :  { %v135_v30 = vmax.f32 %v129_v26, 0.0  ;;  %v124_v31 = vadd.f32 %v123_v28, %v31_v27  ;;  %v411_v26 = vpop.permute.xlu0 %410 }
  0xcf   :  { %v134_v34 = vmax.f32 %v124_v31, 0.0  ;;  %747 = vmatprep.subr.mxu1 %v135_v30 }
  0xd0   :  { %748 = vmatpush3.msra.mxu1 %v135_v30  ;;  %v588_v30 = vpop.permute.xlu1 %587 }
  0xd1   :  { %749 = vmatprep.subr.mxu1 %v134_v34 }
  0xd2   :  { %750 = vmatpush3.msra.mxu1 %v134_v34 }
  0xd3   :  { %751 = vmatprep.subr.mxu1 %v133_v35 }
  0xd4   :  { %752 = vmatpush3.msra.mxu1 %v133_v35 }
  0xd5   :  { %753 = vmatprep.subr.mxu1 %v132_v36 }
  0xd6   :  { %754 = vmatpush3.msra.mxu1 %v132_v36 }
  0xd7   :  { %756 = vmatmul.mubr.msk.f32.vlgmr.msra.gmra.mxu1 %vm160_vm1, %v137_v9  ;;  %778 = vmatprep.subr.mxu1 %v836_v53 }
  0xd8   :  { %758 = vmatprep.mubr.msk.f32.mxu1 %vm160_vm1, %v138_v8 }
  0xdb   :  { %759 = vmatmul.mubr.msk.f32.gmra.mxu1 %vm160_vm1, %v139_v7 }
  0xdc   :  { %782 = vmatprep.mubr.msk.f32.mxu1 %vm837_vm2, %v836_v53 }
 0x197   :  { %v757_v38 = vpop.f32.mrf.mxu1 }
 0x198   :  { %v241_v45 = vadd.f32 %v757_v38, %v148_v43 }
 0x199   :  { %v235_v40 = vpop.f32.mrf.mxu1 }
 0x19a   :  { %v236_v49 = vadd.f32 %v235_v40, %v143_v48  ;;  %v255_v51 = vmax.f32 %v241_v45, 0.0 }
 0x19b   :  { %v760_v41 = vpop.f32.mrf.mxu1 }
 0x19c   :  { %v251_v42 = vadd.f32 %v760_v41, %v158_v37  ;;  %v254_v52 = vmax.f32 %v236_v49, 0.0 }
 0x19d   :  { %v245_v44 = vpop.f32.mrf.mxu1 }
 0x19e   :  { %v257_v46 = vmax.f32 %v251_v42, 0.0  ;;  %v246_v47 = vadd.f32 %v245_v44, %v153_v39 }
 0x1a0   :  { %v256_v50 = vmax.f32 %v246_v47, 0.0  ;;  %761 = vmatprep.subr.mxu0 %v257_v46 }
 0x1a1   :  { %762 = vmatpush3.msra.mxu0 %v257_v46 }
 0x1a2   :  { %763 = vmatprep.subr.mxu0 %v256_v50 }
 0x1a3   :  { %764 = vmatpush3.msra.mxu0 %v256_v50 }
 0x1a4   :  { %765 = vmatprep.subr.mxu0 %v255_v51 }
 0x1a5   :  { %766 = vmatpush3.msra.mxu0 %v255_v51 }
 0x1a6   :  { %767 = vmatprep.subr.mxu0 %v254_v52 }
 0x1a7   :  { %768 = vmatpush3.msra.mxu0 %v254_v52 }
 0x1a8   :  { %770 = vmatmul.mubr.msk.f32.vlgmr.msra.gmra.mxu0 %vm160_vm1, %v914_v15 }
 0x1a9   :  { %772 = vmatprep.mubr.msk.f32.mxu0 %vm160_vm1, %v908_v14 }
 0x1ac   :  { %773 = vmatmul.mubr.msk.f32.gmra.mxu0 %vm160_vm1, %v902_v13 }
 0x1ad   :  { %775 = vmatprep.mubr.msk.f32.mxu0 %vm160_vm1, %v896_v12 }
 0x1b0   :  { %776 = vmatmul.mubr.msk.f32.gmra.mxu0 %vm160_vm1, %v891_v11 }
 0x1b1   :  { %793 = vmatprep.mubr.msk.f32.mxu0 %vm160_vm1, %v929_v18 }
 0x268   :  { %v771_v59 = vpop.f32.mrf.mxu0 }
 0x269   :  { %v378_v60 = vadd.f32 %v771_v59, %v272_v58 }
 0x26a   :  { %v372_v62 = vpop.f32.mrf.mxu0 }
 0x26b   :  { %v402_v63 = vmax.f32 %v378_v60, 0.0  ;;  %v373_v0 = vadd.f32 %v372_v62, %v267_v61 }
 0x26c   :  { %v774_v1 = vpop.f32.mrf.mxu0 }
 0x26d   :  { %v401_v2 = vmax.f32 %v373_v0, 0.0  ;;  %779 = vmatpush3.msra.mxu1 %v402_v63  ;;  %v388_v7 = vadd.f32 %v774_v1, %v282_v56 }
 0x26e   :  { %v382_v3 = vpop.f32.mrf.mxu0  ;;  %780 = vmatprep.subr.mxu1 %v836_v53 }
 0x26f   :  { %781 = vmatpush3.msra.mxu1 %v401_v2  ;;  %v383_v10 = vadd.f32 %v382_v3, %v277_v57  ;;  %v404_v12 = vmax.f32 %v388_v7, 0.0 }
 0x270   :  { %v777_v4 = vpop.f32.mrf.mxu0  ;;  %783 = vmatmul.mubr.msk.f32.vlgmr.msra.gmra.mxu1 %vm38_vm0, %v935_v19  ;;  %796 = vmatprep.subr.mxu1 %v836_v53 }
 0x271   :  { %v398_v5 = vadd.f32 %v777_v4, %v292_v54  ;;  %800 = vmatprep.mubr.msk.f32.mxu1 %vm837_vm2, %v836_v53  ;;  %v403_v13 = vmax.f32 %v383_v10, 0.0 }
 0x272   :  { %v392_v6 = vpop.f32.mrf.mxu0 }
 0x273   :  { %v406_v8 = vmax.f32 %v398_v5, 0.0  ;;  %v393_v9 = vadd.f32 %v392_v6, %v287_v55 }
 0x275   :  { %v405_v11 = vmax.f32 %v393_v9, 0.0  ;;  %785 = vmatprep.subr.mxu0 %v406_v8 }
 0x276   :  { %786 = vmatpush3.msra.mxu0 %v406_v8 }
 0x277   :  { %787 = vmatprep.subr.mxu0 %v405_v11 }
 0x278   :  { %788 = vmatpush3.msra.mxu0 %v405_v11 }
 0x279   :  { %789 = vmatprep.subr.mxu0 %v404_v12 }
 0x27a   :  { %790 = vmatpush3.msra.mxu0 %v404_v12 }
 0x27b   :  { %791 = vmatprep.subr.mxu0 %v403_v13 }
 0x27c   :  { %792 = vmatpush3.msra.mxu0 %v403_v13 }
 0x27d   :  { %794 = vmatmul.mubr.msk.f32.vlgmr.msra.gmra.mxu0 %vm160_vm1, %v924_v17 }
 0x330   :  { %v481_v14 = vpop.f32.mrf.mxu1 }
 0x331   :  { %v482_v27 = vadd.f32 %v481_v14, %v411_v26 }
 0x332   :  { %v784_v15 = vpop.f32.mrf.mxu1 }
 0x333   :  { %v697_v28 = vmul.f32 -1.442695, %v482_v27 }
 0x335   :  { %809 = vpow2.f32 %v697_v28 }
 0x33d   :  { %v795_v18 = vpop.f32.mrf.mxu0 }
 0x33e   :  { %v579_v19 = vadd.f32 %v795_v18, %v501_v16 }
 0x33f   :  { %v573_v22 = vpop.f32.mrf.mxu0 }
 0x340   :  { %v583_v23 = vmax.f32 %v579_v19, 0.0  ;;  %v574_v24 = vadd.f32 %v573_v22, %v496_v21 }
 0x342   :  { %v582_v25 = vmax.f32 %v574_v24, 0.0  ;;  %797 = vmatpush3.msra.mxu1 %v583_v23  ;;  %v810_v17 = vpop.eup %809 }
 0x343   :  { %798 = vmatprep.subr.mxu1 %v836_v53  ;;  %v488_v29 = vadd.f32 1.0, %v810_v17 }
 0x344   :  { %799 = vmatpush3.msra.mxu1 %v582_v25 }
 0x345   :  { %801 = vmatmul.mubr.msk.f32.vlgmr.msra.gmra.mxu1 %vm38_vm0, %v941_v20  ;;  %811 = vrcp.f32 %v488_v29 }
 0x352   :  { %v812_v35 = vpop.eup %811 }
 0x405   :  { %v658_v31 = vpop.f32.mrf.mxu1 }
 0x406   :  { %v659_v32 = vadd.f32 %v658_v31, %v588_v30 }
 0x407   :  { %v802_v33 = vpop.f32.mrf.mxu1 }
 0x408   :  { %v663_v34 = vrot.slane %v659_v32, 7 }
 0x40a   :  { %v666_v36 = vsel %vm665_vm3, %v812_v35, %v663_v34 }
 0x40b   :  { %667 = vst [vmem:[#allocation2] sm:$0x3] %v666_v36 }
 0x40c   :  { %824 = shalt.err (!%p821_p4)
}
 0x40d   :  { %677 = dma.vmem_to_hbm [thread:$0]  %s675_s19, 32, %s975_s2, [#allocation3]  }
 0x40e   :  { %833 = dma.done.wait [#allocation3], 32  }
 0x40f   :  { %834 = vsyncadd [#allocation3], 4294967264 }
 0x410   :  { %681 = vsyncpa [#allocation3], 1 }

</bundles_post_ra>
